<compile_context>
chip_gen: v7x
topology: tpu7x:2x2x1
jax: 0.10.0
libtpu: 0.0.40
codegen_flags: <defaults>
</compile_context>

<pallas_src>
import functools
from types import SimpleNamespace

import numpy as np
import jax
import jax.numpy as jnp
from jax import lax
from jax.experimental import pallas as pl
from jax.experimental.pallas import tpu as pltpu


_EPS = 1e-7
_VMEM_LIMIT = 32 * 1024 * 1024   # safe scoped-VMEM request on v5e/v6e/v7x


# ---------------------------------------------------------------------------
# small helpers
# ---------------------------------------------------------------------------
def _pow_gamma(x, gamma):
    if float(gamma) == 2.0:
        return x * x
    return x ** gamma


def _cxcywh_to_xyxy(cx, cy, w, h):
    return cx - 0.5 * w, cy - 0.5 * h, cx + 0.5 * w, cy + 0.5 * h


def _pad_to(n, mult):
    n = max(int(n), 1)
    return int(((n + mult - 1) // mult) * mult)


# ---------------------------------------------------------------------------
# Pallas kernel 1: Hungarian-matcher cost matrix (per batch element)
#   logits [Q,C], pred boxes [Q,4], target labels [1,Tpad] (int32, -1 pad),
#   target boxes (lane-major) [4,Tpad]  ->  cost [Q,Tpad]
# ---------------------------------------------------------------------------
def _cost_kernel(logits_ref, pboxes_ref, labels_ref, tboxes_t_ref, cost_ref,
                 *, w_class, w_bbox, w_giou, alpha, gamma):
    logits = logits_ref[0].astype(jnp.float32)        # [Q, C]
    pbox = pboxes_ref[0].astype(jnp.float32)          # [Q, 4]
    labels = labels_ref[0]                            # [1, T] int32 (-1 = pad)
    tbox_t = tboxes_t_ref[0].astype(jnp.float32)      # [4, T]

    Q, C = logits.shape
    T = labels.shape[-1]

    prob = jax.nn.sigmoid(logits)
    neg_cost = (1.0 - alpha) * _pow_gamma(prob, gamma) * (-jnp.log(1.0 - prob + 1e-8))
    pos_cost = alpha * _pow_gamma(1.0 - prob, gamma) * (-jnp.log(prob + 1e-8))
    diff = pos_cost - neg_cost                         # [Q, C]

    # class-cost gather over target labels -> [Q, T]
    if C <= 64:
        # small class count (peddet): VPU broadcast-select, MXU stays free
        cost_class = jnp.zeros((Q, T), jnp.float32)
        for c in range(C):
            sel = (labels == c).astype(jnp.float32)    # [1, T]
            cost_class = cost_class + diff[:, c:c + 1] * sel
    else:
        onehot = (labels == lax.broadcasted_iota(jnp.int32, (C, T), 0)
                  ).astype(jnp.float32)                # [C, T]
        cost_class = jnp.dot(diff, onehot, preferred_element_type=jnp.float32)

    pcx, pcy, pw, ph = pbox[:, 0:1], pbox[:, 1:2], pbox[:, 2:3], pbox[:, 3:4]      # [Q,1]
    tcx, tcy, tw, th = tbox_t[0:1, :], tbox_t[1:2, :], tbox_t[2:3, :], tbox_t[3:4, :]  # [1,T]

    # L1 cdist in cxcywh space
    cost_bbox = (jnp.abs(pcx - tcx) + jnp.abs(pcy - tcy) +
                 jnp.abs(pw - tw) + jnp.abs(ph - th))                              # [Q,T]

    # pairwise generalized IoU (boxes converted to xyxy)
    px0, py0, px1, py1 = _cxcywh_to_xyxy(pcx, pcy, pw, ph)
    tx0, ty0, tx1, ty1 = _cxcywh_to_xyxy(tcx, tcy, tw, th)
    parea = (px1 - px0) * (py1 - py0)
    tarea = (tx1 - tx0) * (ty1 - ty0)
    iw = jnp.maximum(jnp.minimum(px1, tx1) - jnp.maximum(px0, tx0), 0.0)
    ih = jnp.maximum(jnp.minimum(py1, ty1) - jnp.maximum(py0, ty0), 0.0)
    inter = iw * ih
    union = parea + tarea - inter
    iou = inter / (union + _EPS)
    ew = jnp.maximum(px1, tx1) - jnp.minimum(px0, tx0)
    eh = jnp.maximum(py1, ty1) - jnp.minimum(py0, ty0)
    earea = ew * eh
    giou = iou - (earea - union) / (earea + _EPS)

    cost = w_bbox * cost_bbox + w_class * cost_class + w_giou * (-giou)
    cost_ref[0] = cost.astype(cost_ref.dtype)


def _pairwise_cost(logits, pboxes, labels_t, tboxes_t, w_class, w_bbox, w_giou):
    B, Q, C = logits.shape
    T = tboxes_t.shape[-1]
    kern = functools.partial(_cost_kernel, w_class=float(w_class),
                             w_bbox=float(w_bbox), w_giou=float(w_giou),
                             alpha=0.25, gamma=2.0)   # matcher uses fixed alpha/gamma
    return pl.pallas_call(
        kern,
        out_shape=jax.ShapeDtypeStruct((B, Q, T), jnp.float32),
        grid=(B,),
        in_specs=[pl.BlockSpec((1, Q, C), lambda b: (b, 0, 0)),
                  pl.BlockSpec((1, Q, 4), lambda b: (b, 0, 0)),
                  pl.BlockSpec((1, 1, T), lambda b: (b, 0, 0)),
                  pl.BlockSpec((1, 4, T), lambda b: (b, 0, 0))],
        out_specs=pl.BlockSpec((1, Q, T), lambda b: (b, 0, 0)),
        compiler_params=pltpu.CompilerParams(
            dimension_semantics=("parallel",),
            vmem_limit_bytes=_VMEM_LIMIT),
    )(logits, pboxes, labels_t, tboxes_t)


# ---------------------------------------------------------------------------
# Pallas kernel 2: sigmoid focal classification loss with ignore-region
# masking; one-hot built in-kernel from int labels; per-batch scalar output.
# ---------------------------------------------------------------------------
def _focal_kernel(logits_ref, mlab_ref, pboxes_ref, ignboxes_t_ref,
                  ign_valid_ref, out_ref, *, alpha, gamma, ign_thr):
    logits = logits_ref[0].astype(jnp.float32)        # [Q, C]
    mlab = mlab_ref[0]                                 # [Q, 1] int32 (-1 = bg)
    pbox = pboxes_ref[0].astype(jnp.float32)           # [Q, 4]
    ibox_t = ignboxes_t_ref[0].astype(jnp.float32)     # [4, I]
    ivalid = ign_valid_ref[0].astype(jnp.float32)      # [1, I]

    Q, C = logits.shape
    cls_iota = lax.broadcasted_iota(jnp.int32, (Q, C), 1)
    tgt = (cls_iota == mlab).astype(jnp.float32)       # [Q, C] one-hot (bg row = 0)
    matched = (mlab >= 0).astype(jnp.float32)          # [Q, 1]

    prob = jax.nn.sigmoid(logits)
    # numerically stable binary_cross_entropy_with_logits
    ce = (jnp.maximum(logits, 0.0) - logits * tgt +
          jnp.log(1.0 + jnp.exp(-jnp.abs(logits))))
    p_t = prob * tgt + (1.0 - prob) * (1.0 - tgt)
    loss = ce * _pow_gamma(1.0 - p_t, gamma)
    alpha_t = alpha * tgt + (1.0 - alpha) * (1.0 - tgt)
    per_q = jnp.sum(alpha_t * loss, axis=-1, keepdims=True)   # [Q, 1]

    # IoF(pred, ignore) = intersection / pred_area   (cxcywh -> xyxy)
    pcx, pcy, pw, ph = pbox[:, 0:1], pbox[:, 1:2], pbox[:, 2:3], pbox[:, 3:4]
    icx, icy, iw_, ih_ = ibox_t[0:1, :], ibox_t[1:2, :], ibox_t[2:3, :], ibox_t[3:4, :]
    px0, py0, px1, py1 = _cxcywh_to_xyxy(pcx, pcy, pw, ph)
    ix0, iy0, ix1, iy1 = _cxcywh_to_xyxy(icx, icy, iw_, ih_)
    interw = jnp.maximum(jnp.minimum(px1, ix1) - jnp.maximum(px0, ix0), 0.0)
    interh = jnp.maximum(jnp.minimum(py1, iy1) - jnp.maximum(py0, iy0), 0.0)
    inter = interw * interh                            # [Q, I]
    parea = (px1 - px0) * (py1 - py0)                  # [Q, 1]
    iof = (inter / jnp.maximum(parea, _EPS)) * ivalid  # zero padded ignore boxes
    iof_max = jnp.max(iof, axis=-1, keepdims=True)     # [Q, 1]

    # predictions mostly inside ignore regions are dropped from the focal
    # loss; matched (positive) queries are always kept.
    keep = jnp.where(jnp.logical_or(iof_max < ign_thr, matched > 0.5), 1.0, 0.0)
    out_ref[0] = jnp.sum(per_q * keep, axis=0, keepdims=True).astype(out_ref.dtype)


def _focal_loss(logits, matched_labels, pboxes, ignboxes_t, ign_valid,
                alpha, ign_thr):
    B, Q, C = logits.shape
    I = ignboxes_t.shape[-1]
    kern = functools.partial(_focal_kernel, alpha=float(alpha), gamma=2.0,
                             ign_thr=float(ign_thr))
    return pl.pallas_call(
        kern,
        out_shape=jax.ShapeDtypeStruct((B, 1, 1), jnp.float32),
        grid=(B,),
        in_specs=[pl.BlockSpec((1, Q, C), lambda b: (b, 0, 0)),
                  pl.BlockSpec((1, Q, 1), lambda b: (b, 0, 0)),
                  pl.BlockSpec((1, Q, 4), lambda b: (b, 0, 0)),
                  pl.BlockSpec((1, 4, I), lambda b: (b, 0, 0)),
                  pl.BlockSpec((1, 1, I), lambda b: (b, 0, 0))],
        out_specs=pl.BlockSpec((1, 1, 1), lambda b: (b, 0, 0)),
        compiler_params=pltpu.CompilerParams(
            dimension_semantics=("parallel",),
            vmem_limit_bytes=_VMEM_LIMIT),
    )(logits, matched_labels, pboxes, ignboxes_t, ign_valid)


# ---------------------------------------------------------------------------
# Pallas kernel 3: matched-pair L1 + GIoU box losses (lane-major [4, Npad],
# scalar sums out)
# ---------------------------------------------------------------------------
def _box_kernel(sbox_ref, tbox_ref, valid_ref, l1_ref, giou_ref):
    s = sbox_ref[...].astype(jnp.float32)              # [4, N]  cxcywh
    t = tbox_ref[...].astype(jnp.float32)              # [4, N]  cxcywh
    valid = valid_ref[...].astype(jnp.float32)         # [1, N]

    l1 = jnp.sum(jnp.abs(s - t), axis=0, keepdims=True)    # [1, N]

    scx, scy, sw, sh = s[0:1, :], s[1:2, :], s[2:3, :], s[3:4, :]
    tcx, tcy, tw, th = t[0:1, :], t[1:2, :], t[2:3, :], t[3:4, :]
    sx0, sy0, sx1, sy1 = _cxcywh_to_xyxy(scx, scy, sw, sh)
    tx0, ty0, tx1, ty1 = _cxcywh_to_xyxy(tcx, tcy, tw, th)
    sarea = (sx1 - sx0) * (sy1 - sy0)
    tarea = (tx1 - tx0) * (ty1 - ty0)
    iw = jnp.maximum(jnp.minimum(sx1, tx1) - jnp.maximum(sx0, tx0), 0.0)
    ih = jnp.maximum(jnp.minimum(sy1, ty1) - jnp.maximum(sy0, ty0), 0.0)
    inter = iw * ih
    union = sarea + tarea - inter
    iou = inter / (union + _EPS)
    ew = jnp.maximum(sx1, tx1) - jnp.minimum(sx0, tx0)
    eh = jnp.maximum(sy1, ty1) - jnp.minimum(sy0, ty0)
    earea = ew * eh
    giou = iou - (earea - union) / (earea + _EPS)

    l1_ref[...] = jnp.sum(l1 * valid, axis=1, keepdims=True).astype(l1_ref.dtype)
    giou_ref[...] = jnp.sum((1.0 - giou) * valid, axis=1,
                            keepdims=True).astype(giou_ref.dtype)


def _box_losses(sbox_t, tbox_t, valid):
    return pl.pallas_call(
        _box_kernel,
        out_shape=(jax.ShapeDtypeStruct((1, 1), jnp.float32),
                   jax.ShapeDtypeStruct((1, 1), jnp.float32)),
        compiler_params=pltpu.CompilerParams(vmem_limit_bytes=_VMEM_LIMIT),
    )(sbox_t, tbox_t, valid)


# ---------------------------------------------------------------------------
# host-side exact Hungarian assignment (replaces scipy.linear_sum_assignment)
# ---------------------------------------------------------------------------
# TODO(synk): Hungarian matching has no clean Pallas equivalent; it runs on
# host numpy on the kernel-produced cost matrix (the only host sync).
def _hungarian(cost_qt):
    """cost_qt: [Q, T] with T <= Q. Returns (query_idx, target_idx)."""
    a = np.asarray(cost_qt, dtype=np.float64).T   # rows = targets, cols = queries
    n, m = a.shape
    INF = 1e18
    u = np.zeros(n + 1)
    v = np.zeros(m + 1)
    p = np.zeros(m + 1, dtype=np.int64)
    way = np.zeros(m + 1, dtype=np.int64)
    for i in range(1, n + 1):
        p[0] = i
        j0 = 0
        minv = np.full(m + 1, INF)
        used = np.zeros(m + 1, dtype=bool)
        while True:
            used[j0] = True
            i0 = p[j0]
            delta = INF
            j1 = -1
            for j in range(1, m + 1):
                if not used[j]:
                    cur = a[i0 - 1, j - 1] - u[i0] - v[j]
                    if cur < minv[j]:
                        minv[j] = cur
                        way[j] = j0
                    if minv[j] < delta:
                        delta = minv[j]
                        j1 = j
            for j in range(m + 1):
                if used[j]:
                    u[p[j]] += delta
                    v[j] -= delta
                else:
                    minv[j] -= delta
            j0 = j1
            if p[j0] == 0:
                break
        while True:
            j1 = way[j0]
            p[j0] = p[j1]
            j0 = j1
            if j0 == 0:
                break
    q_idx, t_idx = [], []
    for j in range(1, m + 1):
        if p[j] != 0:
            q_idx.append(j - 1)
            t_idx.append(p[j] - 1)
    return np.asarray(q_idx, dtype=np.int64), np.asarray(t_idx, dtype=np.int64)


# ---------------------------------------------------------------------------
# DetFocalDiceLoss (Pallas)
# ---------------------------------------------------------------------------
class DetFocalDiceLossPallas:
    def __init__(self, cfg):
        self.cfg = cfg
        weight_dict = {'loss_ce': cfg.class_weight,
                       'loss_bbox': cfg.bbox_weight,
                       'loss_giou': cfg.giou_weight}
        if cfg.deep_supervision:
            aux = {}
            for i in range(cfg.dec_layers - 1):
                aux.update({k + f'_{i}': v for k, v in weight_dict.items()})
            aux.update({k + '_enc': v for k, v in weight_dict.items()})
            weight_dict.update(aux)
        self.weight_dict = weight_dict
        self.num_classes = cfg.num_classes
        self.focal_alpha = cfg.focal_alpha
        self.ign_thr = cfg.ign_thr

    def __call__(self, outputs, targets, **kwargs):
        logits = jnp.asarray(outputs['pred_logits'], jnp.float32)   # [B, Q, C]
        pboxes = jnp.asarray(outputs['pred_boxes'], jnp.float32)    # [B, Q, 4]
        B, Q, C = logits.shape

        sizes = [int(np.asarray(t['labels']).shape[0]) for t in targets]
        Tpad = _pad_to(max(max(sizes), 1), 128)   # lane-dense target axis

        # padded, lane-major target tensors for the cost kernel
        labels_t = np.full((B, 1, Tpad), -1, np.int32)      # -1 => padded column
        tboxes_t = np.zeros((B, 4, Tpad), np.float32)
        tboxes_t[:, :2, :] = 0.5
        tboxes_t[:, 2:, :] = 0.1   # padded columns: dummy valid boxes (unused)
        for b, t in enumerate(targets):
            n = sizes[b]
            if n:
                labels_t[b, 0, :n] = np.asarray(t['labels']).astype(np.int32)
                tboxes_t[b, :, :n] = np.asarray(t['boxes'], np.float32).T

        # ---- kernel 1: matcher cost matrix ----
        cost = _pairwise_cost(logits, pboxes, jnp.asarray(labels_t),
                              jnp.asarray(tboxes_t),
                              self.cfg.class_weight, self.cfg.bbox_weight,
                              self.cfg.giou_weight)
        cost_np = np.asarray(jax.device_get(cost))          # single host sync

        indices = []
        for b in range(B):
            n = sizes[b]
            if n == 0:
                indices.append((np.zeros(0, np.int64), np.zeros(0, np.int64)))
            else:
                indices.append(_hungarian(cost_np[b, :, :n]))

        # TODO(synk): distributed all_reduce / world-size clamp of num_boxes (ginfo) omitted
        num_boxes = float(max(sum(sizes), 1))

        # matched query -> class label (-1 = background) + flat gather indices
        nm = int(sum(len(qi) for qi, _ in indices))
        Npad = _pad_to(nm, 128)
        matched_labels = np.full((B, Q, 1), -1, np.int32)
        batch_idx = np.zeros((Npad,), np.int32)
        query_idx = np.zeros((Npad,), np.int32)
        gt_labels = np.zeros((Npad,), np.int32)
        tbox_pair = np.zeros((4, Npad), np.float32)
        tbox_pair[:2, :] = 0.5
        tbox_pair[2:, :] = 0.1
        valid_pair = np.zeros((1, Npad), np.float32)
        r = 0
        for b, (qi, ti) in enumerate(indices):
            lb = np.asarray(targets[b]['labels']).astype(np.int32)
            tb = np.asarray(targets[b]['boxes'], np.float32)
            for q, t in zip(qi, ti):
                matched_labels[b, q, 0] = lb[t]
                batch_idx[r] = b
                query_idx[r] = q
                gt_labels[r] = lb[t]
                tbox_pair[:, r] = tb[t]
                valid_pair[0, r] = 1.0
                r += 1

        # padded ignore regions (lane-major)
        isizes = [int(np.asarray(t.get('ignore', np.zeros((0, 4)))).shape[0])
                  for t in targets]
        Ipad = _pad_to(max(max(isizes), 1), 128)
        ignboxes_t = np.zeros((B, 4, Ipad), np.float32)
        ignboxes_t[:, :2, :] = 0.5
        ignboxes_t[:, 2:, :] = 0.1
        ign_valid = np.zeros((B, 1, Ipad), np.float32)
        for b, t in enumerate(targets):
            n = isizes[b]
            if n:
                ignboxes_t[b, :, :n] = np.asarray(t['ignore'], np.float32).T
                ign_valid[b, 0, :n] = 1.0

        # ---- kernel 2: focal classification loss (per-batch scalar sums) ----
        focal_sums = _focal_loss(logits, jnp.asarray(matched_labels), pboxes,
                                 jnp.asarray(ignboxes_t), jnp.asarray(ign_valid),
                                 self.focal_alpha, self.ign_thr)   # [B,1,1]
        loss_ce = jnp.sum(focal_sums) / num_boxes

        # ---- kernel 3: matched box losses (pred boxes gathered on device) ----
        b_idx = jnp.asarray(batch_idx)
        q_idx = jnp.asarray(query_idx)
        valid_dev = jnp.asarray(valid_pair)
        sbox_pair = jnp.transpose(pboxes[b_idx, q_idx, :])     # [4, Npad]
        l1_sum, giou_sum = _box_losses(sbox_pair, jnp.asarray(tbox_pair),
                                       valid_dev)
        loss_bbox = l1_sum[0, 0] / num_boxes
        loss_giou = giou_sum[0, 0] / num_boxes

        # diagnostic class_error computed on device (no host sync of logits)
        if nm > 0:
            ml = logits[b_idx, q_idx, :]                       # [Npad, C]
            pred_cls = jnp.argmax(ml, axis=-1).astype(jnp.int32)
            correct = (pred_cls == jnp.asarray(gt_labels)).astype(jnp.float32)
            acc = 100.0 * jnp.sum(correct * valid_dev[0]) / float(nm)
            class_error = (100.0 - acc).astype(jnp.float32)
        else:
            class_error = jnp.asarray(100.0, jnp.float32)

        losses = {'loss_ce': loss_ce, 'loss_bbox': loss_bbox,
                  'loss_giou': loss_giou, 'class_error': class_error}
        out = {}
        for k, v in losses.items():
            if k in self.weight_dict:
                out[k] = v * self.weight_dict[k]
            elif 'loss' in k:
                continue   # popped, as in the reference forward
            else:
                out[k] = v
        return out


# ---------------------------------------------------------------------------
if __name__ == "__main__":
    key = jax.random.PRNGKey(0)
    B, Q, C = 2, 16, 4        # batch, queries, classes

    k1, k2, k3, k4, k5 = jax.random.split(key, 5)
    pred_logits = jax.random.normal(k1, (B, Q, C), jnp.float32)
    cxcy = jax.random.uniform(k2, (B, Q, 2), minval=0.2, maxval=0.8)
    wh = jax.random.uniform(k3, (B, Q, 2), minval=0.05, maxval=0.4)
    pred_boxes = jnp.concatenate([cxcy, wh], axis=-1)
    outputs = {'pred_logits': pred_logits, 'pred_boxes': pred_boxes}

    def mk_boxes(k, n):
        kc, kw = jax.random.split(k)
        c = jax.random.uniform(kc, (n, 2), minval=0.2, maxval=0.8)
        w = jax.random.uniform(kw, (n, 2), minval=0.05, maxval=0.4)
        return np.asarray(jnp.concatenate([c, w], axis=-1))

    targets = [
        {'labels': np.array([0, 2, 1], np.int64),
         'boxes': mk_boxes(k4, 3),
         'ignore': mk_boxes(jax.random.fold_in(k4, 1), 1)},
        {'labels': np.array([3, 1], np.int64),
         'boxes': mk_boxes(k5, 2),
         'ignore': mk_boxes(jax.random.fold_in(k5, 1), 2)},
    ]

    cfg = SimpleNamespace(class_weight=2.0, bbox_weight=5.0, giou_weight=2.0,
                          focal_alpha=0.25, ign_thr=0.5, num_classes=C,
                          deep_supervision=False, dec_layers=6, ginfo=None)

    loss_mod = DetFocalDiceLossPallas(cfg)
    losses = loss_mod(outputs, targets)
    jax.block_until_ready(losses)
    print("KERNEL_OK")
</pallas_src>

<mosaic_0001>
module attributes {stable_mosaic.version = 11 : i64} {
  func.func @_cost_kernel(%arg0: i32, %arg1: memref<1x16x4xf32, #tpu.memory_space<vmem>>, %arg2: memref<1x16x4xf32, #tpu.memory_space<vmem>>, %arg3: memref<1x1x128xi32, #tpu.memory_space<vmem>>, %arg4: memref<1x4x128xf32, #tpu.memory_space<vmem>>, %arg5: memref<1x16x128xf32, #tpu.memory_space<vmem>>) attributes {dimension_semantics = [#tpu.dimension_semantics<parallel>], iteration_bounds = array<i64: 2>, scalar_prefetch = 0 : i64, scratch_operands = 0 : i64, tpu.core_type = #tpu.core_type<tc>, window_params = [{transform_indices = @transform_0, window_bounds = array<i64: 1, 16, 4>}, {transform_indices = @transform_1, window_bounds = array<i64: 1, 16, 4>}, {transform_indices = @transform_2, window_bounds = array<i64: 1, 1, 128>}, {transform_indices = @transform_3, window_bounds = array<i64: 1, 4, 128>}, {transform_indices = @transform_4, window_bounds = array<i64: 1, 16, 128>}]} {
    %c0 = arith.constant 0 : index
    %c0_0 = arith.constant 0 : index
    %c0_1 = arith.constant 0 : index
    %0 = vector.load %arg1[%c0, %c0_0, %c0_1] : memref<1x16x4xf32, #tpu.memory_space<vmem>>, vector<1x16x4xf32>
    %1 = vector.shape_cast %0 : vector<1x16x4xf32> to vector<16x4xf32>
    %c0_2 = arith.constant 0 : index
    %c0_3 = arith.constant 0 : index
    %c0_4 = arith.constant 0 : index
    %2 = vector.load %arg2[%c0_2, %c0_3, %c0_4] : memref<1x16x4xf32, #tpu.memory_space<vmem>>, vector<1x16x4xf32>
    %3 = vector.shape_cast %2 : vector<1x16x4xf32> to vector<16x4xf32>
    %c0_5 = arith.constant 0 : index
    %c0_6 = arith.constant 0 : index
    %c0_7 = arith.constant 0 : index
    %4 = vector.load %arg3[%c0_5, %c0_6, %c0_7] : memref<1x1x128xi32, #tpu.memory_space<vmem>>, vector<1x1x128xi32>
    %5 = vector.shape_cast %4 : vector<1x1x128xi32> to vector<1x128xi32>
    %c0_8 = arith.constant 0 : index
    %c0_9 = arith.constant 0 : index
    %c0_10 = arith.constant 0 : index
    %6 = vector.load %arg4[%c0_8, %c0_9, %c0_10] : memref<1x4x128xf32, #tpu.memory_space<vmem>>, vector<1x4x128xf32>
    %7 = vector.shape_cast %6 : vector<1x4x128xf32> to vector<4x128xf32>
    %8 = arith.negf %1 : vector<16x4xf32>
    %9 = math.exp %8 : vector<16x4xf32>
    %cst = arith.constant 1.000000e+00 : f32
    %10 = vector.broadcast %cst : f32 to vector<16x4xf32>
    %11 = arith.addf %10, %9 : vector<16x4xf32>
    %12 = arith.divf %10, %11 : vector<16x4xf32>
    %13 = arith.mulf %12, %12 : vector<16x4xf32>
    %cst_11 = arith.constant 7.500000e-01 : f32
    %14 = vector.broadcast %cst_11 : f32 to vector<16x4xf32>
    %15 = arith.mulf %14, %13 : vector<16x4xf32>
    %cst_12 = arith.constant 1.000000e+00 : f32
    %16 = vector.broadcast %cst_12 : f32 to vector<16x4xf32>
    %17 = arith.subf %16, %12 : vector<16x4xf32>
    %cst_13 = arith.constant 9.99999993E-9 : f32
    %18 = vector.broadcast %cst_13 : f32 to vector<16x4xf32>
    %19 = arith.addf %17, %18 : vector<16x4xf32>
    %20 = math.log %19 : vector<16x4xf32>
    %cst_14 = arith.constant 0.000000e+00 : f32
    %21 = vector.broadcast %cst_14 : f32 to vector<16x4xf32>
    %22 = arith.subf %21, %20 : vector<16x4xf32>
    %23 = arith.mulf %15, %22 : vector<16x4xf32>
    %cst_15 = arith.constant 1.000000e+00 : f32
    %24 = vector.broadcast %cst_15 : f32 to vector<16x4xf32>
    %25 = arith.subf %24, %12 : vector<16x4xf32>
    %26 = arith.mulf %25, %25 : vector<16x4xf32>
    %cst_16 = arith.constant 2.500000e-01 : f32
    %27 = vector.broadcast %cst_16 : f32 to vector<16x4xf32>
    %28 = arith.mulf %27, %26 : vector<16x4xf32>
    %cst_17 = arith.constant 9.99999993E-9 : f32
    %29 = vector.broadcast %cst_17 : f32 to vector<16x4xf32>
    %30 = arith.addf %12, %29 : vector<16x4xf32>
    %31 = math.log %30 : vector<16x4xf32>
    %cst_18 = arith.constant 0.000000e+00 : f32
    %32 = vector.broadcast %cst_18 : f32 to vector<16x4xf32>
    %33 = arith.subf %32, %31 : vector<16x4xf32>
    %34 = arith.mulf %28, %33 : vector<16x4xf32>
    %35 = arith.subf %34, %23 : vector<16x4xf32>
    %cst_19 = arith.constant 0.000000e+00 : f32
    %36 = vector.broadcast %cst_19 : f32 to vector<16x128xf32>
    %c0_i32 = arith.constant 0 : i32
    %37 = vector.broadcast %c0_i32 : i32 to vector<1x128xi32>
    %38 = arith.cmpi eq, %5, %37 : vector<1x128xi32>
    %39 = arith.extui %38 : vector<1x128xi1> to vector<1x128xi32>
    %40 = arith.sitofp %39 : vector<1x128xi32> to vector<1x128xf32>
    %41 = vector.extract_strided_slice %35 {offsets = [0, 0], sizes = [16, 1], strides = [1, 1]} : vector<16x4xf32> to vector<16x1xf32>
    %42 = vector.broadcast %41 : vector<16x1xf32> to vector<16x128xf32>
    %43 = vector.broadcast %40 : vector<1x128xf32> to vector<16x128xf32>
    %44 = arith.mulf %42, %43 : vector<16x128xf32>
    %45 = arith.addf %36, %44 : vector<16x128xf32>
    %c1_i32 = arith.constant 1 : i32
    %46 = vector.broadcast %c1_i32 : i32 to vector<1x128xi32>
    %47 = arith.cmpi eq, %5, %46 : vector<1x128xi32>
    %48 = arith.extui %47 : vector<1x128xi1> to vector<1x128xi32>
    %49 = arith.sitofp %48 : vector<1x128xi32> to vector<1x128xf32>
    %50 = vector.extract_strided_slice %35 {offsets = [0, 1], sizes = [16, 1], strides = [1, 1]} : vector<16x4xf32> to vector<16x1xf32>
    %51 = vector.broadcast %50 : vector<16x1xf32> to vector<16x128xf32>
    %52 = vector.broadcast %49 : vector<1x128xf32> to vector<16x128xf32>
    %53 = arith.mulf %51, %52 : vector<16x128xf32>
    %54 = arith.addf %45, %53 : vector<16x128xf32>
    %c2_i32 = arith.constant 2 : i32
    %55 = vector.broadcast %c2_i32 : i32 to vector<1x128xi32>
    %56 = arith.cmpi eq, %5, %55 : vector<1x128xi32>
    %57 = arith.extui %56 : vector<1x128xi1> to vector<1x128xi32>
    %58 = arith.sitofp %57 : vector<1x128xi32> to vector<1x128xf32>
    %59 = vector.extract_strided_slice %35 {offsets = [0, 2], sizes = [16, 1], strides = [1, 1]} : vector<16x4xf32> to vector<16x1xf32>
    %60 = vector.broadcast %59 : vector<16x1xf32> to vector<16x128xf32>
    %61 = vector.broadcast %58 : vector<1x128xf32> to vector<16x128xf32>
    %62 = arith.mulf %60, %61 : vector<16x128xf32>
    %63 = arith.addf %54, %62 : vector<16x128xf32>
    %c3_i32 = arith.constant 3 : i32
    %64 = vector.broadcast %c3_i32 : i32 to vector<1x128xi32>
    %65 = arith.cmpi eq, %5, %64 : vector<1x128xi32>
    %66 = arith.extui %65 : vector<1x128xi1> to vector<1x128xi32>
    %67 = arith.sitofp %66 : vector<1x128xi32> to vector<1x128xf32>
    %68 = vector.extract_strided_slice %35 {offsets = [0, 3], sizes = [16, 1], strides = [1, 1]} : vector<16x4xf32> to vector<16x1xf32>
    %69 = vector.broadcast %68 : vector<16x1xf32> to vector<16x128xf32>
    %70 = vector.broadcast %67 : vector<1x128xf32> to vector<16x128xf32>
    %71 = arith.mulf %69, %70 : vector<16x128xf32>
    %72 = arith.addf %63, %71 : vector<16x128xf32>
    %73 = vector.extract_strided_slice %3 {offsets = [0, 0], sizes = [16, 1], strides = [1, 1]} : vector<16x4xf32> to vector<16x1xf32>
    %74 = vector.extract_strided_slice %3 {offsets = [0, 1], sizes = [16, 1], strides = [1, 1]} : vector<16x4xf32> to vector<16x1xf32>
    %75 = vector.extract_strided_slice %3 {offsets = [0, 2], sizes = [16, 1], strides = [1, 1]} : vector<16x4xf32> to vector<16x1xf32>
    %76 = vector.extract_strided_slice %3 {offsets = [0, 3], sizes = [16, 1], strides = [1, 1]} : vector<16x4xf32> to vector<16x1xf32>
    %77 = vector.extract_strided_slice %7 {offsets = [0, 0], sizes = [1, 128], strides = [1, 1]} : vector<4x128xf32> to vector<1x128xf32>
    %78 = vector.extract_strided_slice %7 {offsets = [1, 0], sizes = [1, 128], strides = [1, 1]} : vector<4x128xf32> to vector<1x128xf32>
    %79 = vector.extract_strided_slice %7 {offsets = [2, 0], sizes = [1, 128], strides = [1, 1]} : vector<4x128xf32> to vector<1x128xf32>
    %80 = vector.extract_strided_slice %7 {offsets = [3, 0], sizes = [1, 128], strides = [1, 1]} : vector<4x128xf32> to vector<1x128xf32>
    %81 = vector.broadcast %73 : vector<16x1xf32> to vector<16x128xf32>
    %82 = vector.broadcast %77 : vector<1x128xf32> to vector<16x128xf32>
    %83 = arith.subf %81, %82 : vector<16x128xf32>
    %84 = math.absf %83 : vector<16x128xf32>
    %85 = vector.broadcast %74 : vector<16x1xf32> to vector<16x128xf32>
    %86 = vector.broadcast %78 : vector<1x128xf32> to vector<16x128xf32>
    %87 = arith.subf %85, %86 : vector<16x128xf32>
    %88 = math.absf %87 : vector<16x128xf32>
    %89 = arith.addf %84, %88 : vector<16x128xf32>
    %90 = vector.broadcast %75 : vector<16x1xf32> to vector<16x128xf32>
    %91 = vector.broadcast %79 : vector<1x128xf32> to vector<16x128xf32>
    %92 = arith.subf %90, %91 : vector<16x128xf32>
    %93 = math.absf %92 : vector<16x128xf32>
    %94 = arith.addf %89, %93 : vector<16x128xf32>
    %95 = vector.broadcast %76 : vector<16x1xf32> to vector<16x128xf32>
    %96 = vector.broadcast %80 : vector<1x128xf32> to vector<16x128xf32>
    %97 = arith.subf %95, %96 : vector<16x128xf32>
    %98 = math.absf %97 : vector<16x128xf32>
    %99 = arith.addf %94, %98 : vector<16x128xf32>
    %cst_20 = arith.constant 5.000000e-01 : f32
    %100 = vector.broadcast %cst_20 : f32 to vector<16x1xf32>
    %101 = arith.mulf %100, %75 : vector<16x1xf32>
    %102 = arith.subf %73, %101 : vector<16x1xf32>
    %cst_21 = arith.constant 5.000000e-01 : f32
    %103 = vector.broadcast %cst_21 : f32 to vector<16x1xf32>
    %104 = arith.mulf %103, %76 : vector<16x1xf32>
    %105 = arith.subf %74, %104 : vector<16x1xf32>
    %cst_22 = arith.constant 5.000000e-01 : f32
    %106 = vector.broadcast %cst_22 : f32 to vector<16x1xf32>
    %107 = arith.mulf %106, %75 : vector<16x1xf32>
    %108 = arith.addf %73, %107 : vector<16x1xf32>
    %cst_23 = arith.constant 5.000000e-01 : f32
    %109 = vector.broadcast %cst_23 : f32 to vector<16x1xf32>
    %110 = arith.mulf %109, %76 : vector<16x1xf32>
    %111 = arith.addf %74, %110 : vector<16x1xf32>
    %cst_24 = arith.constant 5.000000e-01 : f32
    %112 = vector.broadcast %cst_24 : f32 to vector<1x128xf32>
    %113 = arith.mulf %112, %79 : vector<1x128xf32>
    %114 = arith.subf %77, %113 : vector<1x128xf32>
    %cst_25 = arith.constant 5.000000e-01 : f32
    %115 = vector.broadcast %cst_25 : f32 to vector<1x128xf32>
    %116 = arith.mulf %115, %80 : vector<1x128xf32>
    %117 = arith.subf %78, %116 : vector<1x128xf32>
    %cst_26 = arith.constant 5.000000e-01 : f32
    %118 = vector.broadcast %cst_26 : f32 to vector<1x128xf32>
    %119 = arith.mulf %118, %79 : vector<1x128xf32>
    %120 = arith.addf %77, %119 : vector<1x128xf32>
    %cst_27 = arith.constant 5.000000e-01 : f32
    %121 = vector.broadcast %cst_27 : f32 to vector<1x128xf32>
    %122 = arith.mulf %121, %80 : vector<1x128xf32>
    %123 = arith.addf %78, %122 : vector<1x128xf32>
    %124 = arith.subf %108, %102 : vector<16x1xf32>
    %125 = arith.subf %111, %105 : vector<16x1xf32>
    %126 = arith.mulf %124, %125 : vector<16x1xf32>
    %127 = arith.subf %120, %114 : vector<1x128xf32>
    %128 = arith.subf %123, %117 : vector<1x128xf32>
    %129 = arith.mulf %127, %128 : vector<1x128xf32>
    %130 = vector.broadcast %108 : vector<16x1xf32> to vector<16x128xf32>
    %131 = vector.broadcast %120 : vector<1x128xf32> to vector<16x128xf32>
    %132 = arith.minimumf %130, %131 : vector<16x128xf32>
    %133 = vector.broadcast %102 : vector<16x1xf32> to vector<16x128xf32>
    %134 = vector.broadcast %114 : vector<1x128xf32> to vector<16x128xf32>
    %135 = arith.maximumf %133, %134 : vector<16x128xf32>
    %136 = arith.subf %132, %135 : vector<16x128xf32>
    %cst_28 = arith.constant 0.000000e+00 : f32
    %137 = vector.broadcast %cst_28 : f32 to vector<16x128xf32>
    %138 = arith.maximumf %136, %137 : vector<16x128xf32>
    %139 = vector.broadcast %111 : vector<16x1xf32> to vector<16x128xf32>
    %140 = vector.broadcast %123 : vector<1x128xf32> to vector<16x128xf32>
    %141 = arith.minimumf %139, %140 : vector<16x128xf32>
    %142 = vector.broadcast %105 : vector<16x1xf32> to vector<16x128xf32>
    %143 = vector.broadcast %117 : vector<1x128xf32> to vector<16x128xf32>
    %144 = arith.maximumf %142, %143 : vector<16x128xf32>
    %145 = arith.subf %141, %144 : vector<16x128xf32>
    %cst_29 = arith.constant 0.000000e+00 : f32
    %146 = vector.broadcast %cst_29 : f32 to vector<16x128xf32>
    %147 = arith.maximumf %145, %146 : vector<16x128xf32>
    %148 = arith.mulf %138, %147 : vector<16x128xf32>
    %149 = vector.broadcast %126 : vector<16x1xf32> to vector<16x128xf32>
    %150 = vector.broadcast %129 : vector<1x128xf32> to vector<16x128xf32>
    %151 = arith.addf %149, %150 : vector<16x128xf32>
    %152 = arith.subf %151, %148 : vector<16x128xf32>
    %cst_30 = arith.constant 1.000000e-07 : f32
    %153 = vector.broadcast %cst_30 : f32 to vector<16x128xf32>
    %154 = arith.addf %152, %153 : vector<16x128xf32>
    %155 = arith.divf %148, %154 : vector<16x128xf32>
    %156 = vector.broadcast %108 : vector<16x1xf32> to vector<16x128xf32>
    %157 = vector.broadcast %120 : vector<1x128xf32> to vector<16x128xf32>
    %158 = arith.maximumf %156, %157 : vector<16x128xf32>
    %159 = vector.broadcast %102 : vector<16x1xf32> to vector<16x128xf32>
    %160 = vector.broadcast %114 : vector<1x128xf32> to vector<16x128xf32>
    %161 = arith.minimumf %159, %160 : vector<16x128xf32>
    %162 = arith.subf %158, %161 : vector<16x128xf32>
    %163 = vector.broadcast %111 : vector<16x1xf32> to vector<16x128xf32>
    %164 = vector.broadcast %123 : vector<1x128xf32> to vector<16x128xf32>
    %165 = arith.maximumf %163, %164 : vector<16x128xf32>
    %166 = vector.broadcast %105 : vector<16x1xf32> to vector<16x128xf32>
    %167 = vector.broadcast %117 : vector<1x128xf32> to vector<16x128xf32>
    %168 = arith.minimumf %166, %167 : vector<16x128xf32>
    %169 = arith.subf %165, %168 : vector<16x128xf32>
    %170 = arith.mulf %162, %169 : vector<16x128xf32>
    %171 = arith.subf %170, %152 : vector<16x128xf32>
    %cst_31 = arith.constant 1.000000e-07 : f32
    %172 = vector.broadcast %cst_31 : f32 to vector<16x128xf32>
    %173 = arith.addf %170, %172 : vector<16x128xf32>
    %174 = arith.divf %171, %173 : vector<16x128xf32>
    %175 = arith.subf %155, %174 : vector<16x128xf32>
    %cst_32 = arith.constant 5.000000e+00 : f32
    %176 = vector.broadcast %cst_32 : f32 to vector<16x128xf32>
    %177 = arith.mulf %176, %99 : vector<16x128xf32>
    %cst_33 = arith.constant 2.000000e+00 : f32
    %178 = vector.broadcast %cst_33 : f32 to vector<16x128xf32>
    %179 = arith.mulf %178, %72 : vector<16x128xf32>
    %180 = arith.addf %177, %179 : vector<16x128xf32>
    %cst_34 = arith.constant 0.000000e+00 : f32
    %181 = vector.broadcast %cst_34 : f32 to vector<16x128xf32>
    %182 = arith.subf %181, %175 : vector<16x128xf32>
    %cst_35 = arith.constant 2.000000e+00 : f32
    %183 = vector.broadcast %cst_35 : f32 to vector<16x128xf32>
    %184 = arith.mulf %183, %182 : vector<16x128xf32>
    %185 = arith.addf %180, %184 : vector<16x128xf32>
    %c0_36 = arith.constant 0 : index
    %c0_37 = arith.constant 0 : index
    %c0_38 = arith.constant 0 : index
    %186 = vector.load %arg5[%c0_36, %c0_37, %c0_38] : memref<1x16x128xf32, #tpu.memory_space<vmem>>, vector<1x16x128xf32>
    %187 = vector.shape_cast %186 : vector<1x16x128xf32> to vector<16x128xf32>
    %188 = vector.shape_cast %185 : vector<16x128xf32> to vector<1x16x128xf32>
    tpu.vector_store %arg5[%c0_36, %c0_37, %c0_38], %188 {strides = array<i32>} : memref<1x16x128xf32, #tpu.memory_space<vmem>>, vector<1x16x128xf32>,
    return
  }
  func.func @transform_0(%arg0: i32) -> (i32, i32, i32) {
    %c0_i32 = arith.constant 0 : i32
    %c0_i32_0 = arith.constant 0 : i32
    %c0_i32_1 = arith.constant 0 : i32
    return %arg0, %c0_i32, %c0_i32_0 : i32, i32, i32
  }
  func.func @transform_1(%arg0: i32) -> (i32, i32, i32) {
    %c0_i32 = arith.constant 0 : i32
    %c0_i32_0 = arith.constant 0 : i32
    %c0_i32_1 = arith.constant 0 : i32
    return %arg0, %c0_i32, %c0_i32_0 : i32, i32, i32
  }
  func.func @transform_2(%arg0: i32) -> (i32, i32, i32) {
    %c0_i32 = arith.constant 0 : i32
    %c0_i32_0 = arith.constant 0 : i32
    %c0_i32_1 = arith.constant 0 : i32
    return %arg0, %c0_i32, %c0_i32_0 : i32, i32, i32
  }
  func.func @transform_3(%arg0: i32) -> (i32, i32, i32) {
    %c0_i32 = arith.constant 0 : i32
    %c0_i32_0 = arith.constant 0 : i32
    %c0_i32_1 = arith.constant 0 : i32
    return %arg0, %c0_i32, %c0_i32_0 : i32, i32, i32
  }
  func.func @transform_4(%arg0: i32) -> (i32, i32, i32) {
    %c0_i32 = arith.constant 0 : i32
    %c0_i32_0 = arith.constant 0 : i32
    %c0_i32_1 = arith.constant 0 : i32
    return %arg0, %c0_i32, %c0_i32_0 : i32, i32, i32
  }
}

</mosaic_0001>

<bundles_post_ra>
// kernel: tpu_custom_call.1
= control target key start
LH: loop header
LB: loop body
LE: loop exit
PB: predicated region body
PF: predicated region fallthrough
CT: control target
= control target key end

     0   :  { %9 = vsyncpa [#allocation3], 0  ;;  %s1181_s0 = inlined_call_operand.vmem [shape: f32[2,16,4], index: 0, kind: input, shape index: {}]   ;;  %s1182_s1 = inlined_call_operand.vmem [shape: f32[2,16,4], index: 1, kind: input, shape index: {}]   ;;  %s1183_s2 = inlined_call_operand.vmem [shape: s32[2,1,128], index: 2, kind: input, shape index: {}]   ;;  %s1184_s3 = inlined_call_operand.vmem [shape: f32[2,4,128], index: 3, kind: input, shape index: {}]   ;;  %s1185_s4 = inlined_call_operand.hbm [shape: f32[2,16,128], index: 4, kind: output, shape index: {}]  }
   0x1   :  { %11 = vsyncpa [#allocation3 + $0x1], 0  ;;  %s944_s15 = smov 0   ;;  %s946_s16 = smov 0  }
   0x2   :  { %s948_s17 = smov 0   ;;  %s950_s18 = smov 0  }
   0x3 LB: > { %s965_s19 = sadd.s32 4294967295, %s907_s18   ;;  %s733_s20 = sadd.s32 4294967294, %s907_s18   ;;  %s907_s18 = sphi %s950_s18, %s1191_s18   ;;  %s903_s17 = sphi %s948_s17, %s1190_s17   ;;  %s899_s16 = sphi %s946_s16, %s1189_s16   ;;  %s895_s15 = sphi %s944_s15, %s1188_s15  }
   0x4   : > { %s969_s21 = sadd.s32 1, %s907_s18   ;;  %s128_s22 = sadd.s32 1, %s903_s17 }
   0x5   : > { %s125_s23 = ssub.s32 %s907_s18, %s969_s21  ;;  %p138_p0 = scmp.ne.s32.totalorder %s903_s17, %s899_s16 }
   0x6   : > { %p126_p1 = scmp.eq.s32.totalorder %s125_s23, 0  ;;  %p139_p2 = scmp.eq.s32.totalorder %s965_s19, 1 }
   0x7   : > { %p144_p3 = scmp.ne.s32.totalorder %s899_s16, %s895_s15  ;;  %p145_p4 = scmp.eq.s32.totalorder %s733_s20, 1 }
   0x8   : > { %s980_s24 = scalar_select %p126_p1, %s903_s17, %s128_s22  }
   0x9   : > { %p982_p5 = por %p139_p2, %p138_p0  ;;  %p986_p6 = por %p145_p4, %p144_p3 }
   0xa   : > { %p736_p7 = scmp.ge.s32.totalorder %s907_s18, 1  ;;  %p192_p8 = scmp.lt.s32.totalorder %s907_s18, 3 }
   0xc   : > { %p193_p9 = pnand %p736_p7, %p192_p8 }
   0xd   : > { %p230_p10 = scmp.lt.s32.totalorder (!%p193_p9), %s965_s19, 1  ;;  %v909_v0 = vmov (!%p193_p9), 0   ;;  %s910_s9 = smov (!%p193_p9), 126   ;;  %v912_v37 = vmov (!%p193_p9), 1   ;;  %v913_v43 = vmov (!%p193_p9), 2   ;;  %v914_v61 = vmov (!%p193_p9), 3  }
   0xe   : > { %196 = sbr.rel (%p193_p9) target bundleno = 439 (0x1b7), region = 36  ;;  %805 = vset.pattern.permute.xlu0 (!%p193_p9), %v909_v0  ;;  %806 = vset.pattern.permute.xlu1 (!%p193_p9), %v909_v0  ;;  %s911_s10 = smov (!%p193_p9), 127  }
   0xf   : > { %s756_s29 = sshll.u32 (!%p193_p9), %s965_s19, 8 }
  0x15   : > { %s996_s27 = scalar_select %p230_p10, %s965_s19, 1 }
  0x17   : > { %s754_s28 = sshll.u32 %s996_s27, 4  ;;  %s742_s11 = sshll.u32 %s996_s27, 2 }
  0x18   : > { %s239_s5 = scalar_lea.vmem %s1182_s1, %s754_s28  ;;  %s1005_s8 = scalar_lea.vmem %s1181_s0, %s754_s28 }
  0x19   : > { %v1007_v1 = vld [vmem:[%s239_s5] sm:$0xff]  ;;  %v1009_v2 = vld [vmem:[%s239_s5 + $0x8] sm:$0xff]  ;;  %s246_s14 = scalar_lea.vmem %s1184_s3, %s742_s11  ;;  %s242_s23 = scalar_lea.vmem %s1183_s2, %s996_s27 }
  0x1a   : > { %v247_v3 = vld [vmem:[%s1005_s8] sm:$0xff]  ;;  %v455_v4 = vmul.f32 0.5, %v1007_v1  ;;  %v456_v6 = vmul.f32 0.5, %v1009_v2  ;;  %v248_v26 = vld [vmem:[%s1005_s8 + $0x8] sm:$0xff]  ;;  %s227_s27 = sand.u32 1, %s899_s16   ;;  %s1134_s8 = scalar_lea.hbm %s1185_s4, %s756_s29 }
  0x1b   : > { %v743_v5 = vmul.f32 -1.442695, %v247_v3  ;;  %v744_v27 = vmul.f32 -1.442695, %v248_v26  ;;  %s737_s28 = sshll.u32 %s227_s27, 4 }
  0x1c   : > { %459 = vrot.lane.b32.xlu0 %v455_v4, %s910_s9  ;;  %s229_s30 = scalar_lea.vmem [#allocation2], %s737_s28 }
  0x1d   : > { %821 = vpow2.f32 %v743_v5  ;;  %s638_s5 = sshll.u32 %s229_s30, 4  ;;  %s1136_s5 = int_to_ptr.vmem [resolvable:$true] %s638_s5 }
  0x1e   : > { %s845_s19 = scalar_lea.vmem %s1136_s5, 256 }
  0x1f   : > { %p846_p11 = scmp.ne.s32.totalorder %s1136_s5, %s845_s19 }
  0x20   : > { %461 = vrot.lane.b32.xlu0 %v456_v6, %s910_s9  ;;  %s1140_s9 = scalar_lea.sflag [#allocation3], %s227_s27 }
  0x21   : > { %p847_p12 = pnand %p846_p11, %p982_p5 }
  0x23   : > { %p848_p13 = pneg %p847_p12 }
  0x27   : > { %v822_v7 = vpop.eup %821 }
  0x28   : > { %v259_v8 = vadd.f32 1.0, %v822_v7 }
  0x2a   : > { %823 = vrcp.f32 %v259_v8  ;;  %v311_v8 = vlaneseq }
  0x34   : > { %v824_v9 = vpop.eup %823 }
  0x35   : > { %v269_v10 = vsub.f32 1.0, %v824_v9  ;;  %v285_v11 = vadd.f32 1e-08, %v824_v9  ;;  %v265_v14 = vmul.f32 %v824_v9, %v824_v9 }
  0x37   : > { %v271_v12 = vadd.f32 1e-08, %v269_v10  ;;  %825 = vlog2.f32 %v285_v11  ;;  %v281_v13 = vmul.f32 %v269_v10, %v269_v10  ;;  %v267_v19 = vmul.f32 0.75, %v265_v14 }
  0x39   : > { %827 = vlog2.f32 %v271_v12  ;;  %v283_v16 = vmul.f32 0.25, %v281_v13  ;;  %v1055_v12 = vshrl.u32 %v311_v8, 7  ;;  %v915_v8 = vmov 0.0  }
  0x3a   : > { %829 = vpow2.f32 %v744_v27 }
  0x3b   : > { %v411_v14 = vsub.s32 1, %v1055_v12 }
  0x41   : > { %v826_v15 = vpop.eup %825 }
  0x42   : > { %v288_v17 = vmul.f32 0.6931472, %v826_v15 }
  0x43   : > { %v828_v18 = vpop.eup %827 }
  0x44   : > { %v274_v20 = vmul.f32 0.6931472, %v828_v18  ;;  %v291_v21 = vsub.f32 0.0, %v288_v17  ;;  %v830_v28 = vpop.eup %829  ;;  %v1061_v17 = vsub.s32 0, %v1055_v12 }
  0x45   : > { %v260_v29 = vadd.f32 1.0, %v830_v28 }
  0x46   : > { %v277_v22 = vsub.f32 0.0, %v274_v20  ;;  %v293_v23 = vmul.f32 %v291_v21, %v283_v16 }
  0x47   : > { %831 = vrcp.f32 %v260_v29 }
  0x48   : > { %v279_v24 = vmul.f32 %v277_v22, %v267_v19 }
  0x4a   : > { %v1014_v25 = vsub.f32 %v293_v23, %v279_v24 }
  0x4c   : > { %302 = vperm.xlu0 %805, %v1014_v25  }
  0x51   : > { %v832_v39 = vpop.eup %831 }
  0x52   : > { %v270_v40 = vsub.f32 1.0, %v832_v39  ;;  %v286_v41 = vadd.f32 1e-08, %v832_v39  ;;  %v266_v46 = vmul.f32 %v832_v39, %v832_v39 }
  0x54   : > { %v272_v42 = vadd.f32 1e-08, %v270_v40  ;;  %833 = vlog2.f32 %v286_v41  ;;  %v282_v48 = vmul.f32 %v270_v40, %v270_v40  ;;  %v268_v50 = vmul.f32 0.75, %v266_v46 }
  0x56   : > { %835 = vlog2.f32 %v272_v42  ;;  %v284_v52 = vmul.f32 0.25, %v282_v48 }
  0x5e   : > { %v834_v44 = vpop.eup %833 }
  0x5f   : > { %v290_v49 = vmul.f32 0.6931472, %v834_v44  ;;  %v1078_v44 = vld [vmem:[%s242_s23] sm:$0x1] }
  0x60   : > { %v836_v45 = vpop.eup %835  ;;  %vm297_vm0 = vcmp.eq.s32.totalorder %v1078_v44, 0  ;;  %vm320_vm1 = vcmp.eq.s32.totalorder %v1078_v44, 1  ;;  %vm341_vm2 = vcmp.eq.s32.totalorder %v1078_v44, 2  ;;  %vm362_vm3 = vcmp.eq.s32.totalorder %v1078_v44, 3 }
  0x61   : > { %v276_v47 = vmul.f32 0.6931472, %v836_v45  ;;  %v292_v53 = vsub.f32 0.0, %v290_v49  ;;  %v748_v44 = vsel %vm362_vm3, 1.0, %v915_v8 }
  0x63   : > { %v278_v51 = vsub.f32 0.0, %v276_v47  ;;  %v294_v55 = vmul.f32 %v292_v53, %v284_v52 }
  0x65   : > { %v280_v54 = vmul.f32 %v278_v51, %v268_v50 }
  0x67   : > { %v296_v56 = vsub.f32 %v294_v55, %v280_v54 }
  0x8e   : > { %v460_v30 = vpop.permute.xlu0 %459 }
  0x8f   : > { %v465_v31 = vsub.f32 %v1007_v1, %v460_v30  ;;  %v467_v32 = vadd.f32 %v460_v30, %v1007_v1 }
  0x91   : > { %510 = vperm.xlu0 %805, %v465_v31   ;;  %v475_v33 = vsub.f32 %v467_v32, %v465_v31 }
  0x92   : > { %v462_v34 = vpop.permute.xlu0 %461 }
  0x93   : > { %v466_v35 = vsub.f32 %v1009_v2, %v462_v34  ;;  %v468_v36 = vadd.f32 %v462_v34, %v1009_v2  ;;  %479 = vrot.lane.b32.xlu1 %v475_v33, %s911_s10 }
  0x95   : > { %807 = vset.pattern.permute.xlu0 %v912_v37  ;;  %v476_v38 = vsub.f32 %v468_v36, %v466_v35 }
  0x96   : > { %529 = vperm.xlu0 %807, %v467_v32  }
  0x97   : > { %481 = vrot.lane.b32.xlu1 %v476_v38, %s911_s10  ;;  %s916_s10 = smov [#allocation2]  }
  0x98   : > { %s849_s11 = sshll.u32 %s916_s10, 4  ;;  %s850_s11 = int_to_ptr.vmem [resolvable:$false] %s849_s11 }
  0x99   : > { %s851_s12 = scalar_lea.vmem %s850_s11, 512  ;;  %p852_p0 = scmp.lt.s32.totalorder %s1136_s5, %s850_s11 }
  0x9a   : > { %547 = vperm.xlu0 %807, %v466_v35   ;;  %p853_p1 = scmp.lt.s32.totalorder %s851_s12, %s845_s19 }
  0x9b   : > { %494 = vperm.xlu1 %806, %v467_v32  }
  0x9c   : > { %p854_p2 = por %p853_p1, %p852_p0 }
  0x9e   : > { %402 = vperm.xlu0 %807, %v1007_v1   ;;  %p855_p3 = pnand %p854_p2, %p848_p13 }
  0x9f   : > { %499 = vperm.xlu1 %806, %v468_v36  }
  0xa2   : > { %324 = vperm.xlu0 %807, %v1014_v25  }
  0xa3   : > { %515 = vperm.xlu1 %806, %v466_v35  }
  0xa6   : > { %813 = vset.pattern.permute.xlu0 %v913_v43 }
  0xa7   : > { %808 = vset.pattern.permute.xlu1 %v912_v37  ;;  %420 = vperm.xlu0 %813, %v1007_v1  }
  0xa8   : > { %533 = vperm.xlu1 %808, %v468_v36  }
  0xab   : > { %816 = vset.pattern.permute.xlu0 %v909_v0 }
  0xac   : > { %543 = vperm.xlu1 %808, %v465_v31  }
  0xb0   : > { %809 = vset.pattern.permute.xlu1 %v909_v0 }
  0xb1   : > { %385 = vperm.xlu1 %809, %v1007_v1  }
  0xb5   : > { %390 = vperm.xlu1 %809, %v1009_v2  }
  0xb9   : > { %810 = vset.pattern.permute.xlu1 %v912_v37 }
  0xba   : > { %406 = vperm.xlu1 %810, %v1009_v2  }
  0xbe   : > { %811 = vset.pattern.permute.xlu1 %v909_v0 }
  0xbf   : > { %307 = vperm.xlu1 %811, %v296_v56  }
  0xc3   : > { %812 = vset.pattern.permute.xlu1 %v912_v37 }
  0xc4   : > { %328 = vperm.xlu1 %812, %v296_v56  }
  0xc8   : > { %814 = vset.pattern.permute.xlu1 %v909_v0 }
  0xcb   : > { %v1042_v5 = vpop.permute.xlu0 %302 }
 0x105   : > { %v480_v57 = vpop.permute.xlu1 %479 }
 0x106   : > { %v485_v58 = vmul.f32 %v480_v57, %v475_v33 }
 0x108   : > { %564 = vperm.xlu1 %814, %v485_v58  }
 0x109   : > { %v482_v59 = vpop.permute.xlu1 %481 }
 0x10a   : > { %v486_v60 = vmul.f32 %v482_v59, %v476_v38 }
 0x10c   : > { %815 = vset.pattern.permute.xlu1 %v913_v43  ;;  %569 = vperm.xlu0 %816, %v486_v60  }
 0x10d   : > { %424 = vperm.xlu1 %815, %v1009_v2  }
 0x110   : > { %817 = vset.pattern.permute.xlu0 %v913_v43  ;;  %v511_v6 = vpop.permute.xlu0 %510 }
 0x111   : > { %345 = vperm.xlu1 %815, %v1014_v25   ;;  %349 = vperm.xlu0 %817, %v296_v56  }
 0x115   : > { %818 = vset.pattern.permute.xlu1 %v914_v61  ;;  %819 = vset.pattern.permute.xlu0 %v914_v61  ;;  %v530_v9 = vpop.permute.xlu0 %529  ;;  %v429_v61 = vsub.s32 2, %v1055_v12 }
 0x116   : > { %438 = vperm.xlu1 %818, %v1007_v1   ;;  %442 = vperm.xlu0 %819, %v1009_v2   ;;  %v1048_v2 = vld [vmem:[%s246_s14] sm:$0xf] }
 0x117   : > { %v396_v59 = vrot.slane %v1048_v2, %v1061_v17  ;;  %v412_v60 = vrot.slane %v1048_v2, %v411_v14 }
 0x119   : > { %v548_v16 = vpop.permute.xlu0 %547 }
 0x11a   : > { %366 = vperm.xlu1 %818, %v1014_v25   ;;  %820 = vset.pattern.permute.xlu0 %v909_v0  ;;  %v495_v62 = vpop.permute.xlu1 %494  ;;  %v469_v0 = vmul.f32 0.5, %v1048_v2 }
 0x11c   : > { %v471_v10 = vrot.slane %v469_v0, 2 }
 0x11d   : > { %v1066_v23 = vpop.permute.xlu0 %402 }
 0x11e   : > { %370 = vperm.xlu1 %818, %v296_v56   ;;  %v1038_v63 = vpop.permute.xlu1 %499  ;;  %v473_v13 = vsub.f32 %v1048_v2, %v471_v10  ;;  %v474_v15 = vadd.f32 %v471_v10, %v1048_v2 }
 0x120   : > { %v487_v18 = vsub.f32 %v474_v15, %v473_v13  ;;  %v539_v20 = vrot.slane %v474_v15, %v411_v14  ;;  %v553_v21 = vrot.slane %v473_v13, %v411_v14  ;;  %v505_v22 = vrot.slane %v474_v15, %v1061_v17 }
 0x121   : > { %v521_v24 = vrot.slane %v473_v13, %v1061_v17  ;;  %v1075_v40 = vpop.permute.xlu0 %324  ;;  %v413_v14 = vsub.f32 %v1066_v23, %v412_v60  ;;  %v746_v15 = vsel %vm320_vm1, 1.0, %v915_v8 }
 0x122   : > { %v1040_v3 = vpop.permute.xlu1 %515  ;;  %v489_v26 = vrot.slane %v487_v18, 1  ;;  %v540_v29 = vmin.f32 %v530_v9, %v539_v20  ;;  %v506_v30 = vmin.f32 %v495_v62, %v505_v22  ;;  %v592_v31 = vmax.f32 %v530_v9, %v539_v20 }
 0x123   : > { %v586_v32 = vmax.f32 %v495_v62, %v505_v22  ;;  %v522_v33 = vmax.f32 %v511_v6, %v521_v24  ;;  %v588_v37 = vmin.f32 %v511_v6, %v521_v24  ;;  %v555_v41 = vmax.f32 %v548_v16, %v553_v21 }
 0x124   : > { %v491_v36 = vmul.f32 %v489_v26, %v487_v18  ;;  %v523_v43 = vmax.f32 %v1040_v3, %v521_v24  ;;  %v595_v45 = vmin.f32 %v548_v16, %v553_v21  ;;  %v589_v47 = vmin.f32 %v1040_v3, %v521_v24 }
 0x125   : > { %v524_v42 = vsub.f32 %v506_v30, %v522_v33  ;;  %v590_v46 = vsub.f32 %v586_v32, %v588_v37  ;;  %v507_v49 = vmin.f32 %v1038_v63, %v505_v22  ;;  %v587_v53 = vmax.f32 %v1038_v63, %v505_v22 }
 0x126   : > { %v575_v52 = vrot.slane %v491_v36, %v1061_v17  ;;  %v421_v62 = vpop.permute.xlu0 %420  ;;  %v745_v9 = vsel %vm297_vm0, 1.0, %v915_v8  ;;  %v430_v16 = vrot.slane %v1048_v2, %v429_v61  ;;  %v335_v23 = vrot.slane %v746_v15, %v1061_v17 }
 0x127   : > { %v534_v4 = vpop.permute.xlu1 %533  ;;  %v526_v56 = vmax.f32 %v524_v42, 0.0  ;;  %v525_v57 = vsub.f32 %v507_v49, %v523_v43  ;;  %v591_v58 = vsub.f32 %v587_v53, %v589_v47  ;;  %v314_v26 = vrot.slane %v745_v9, %v1061_v17 }
 0x128   : > { %v541_v34 = vmin.f32 %v534_v4, %v539_v20  ;;  %v593_v38 = vmax.f32 %v534_v4, %v539_v20  ;;  %v447_v30 = vsub.s32 3, %v1055_v12  ;;  %v431_v32 = vsub.f32 %v421_v62, %v430_v16 }
 0x129   : > { %v527_v10 = vmax.f32 %v525_v57, 0.0  ;;  %v316_v12 = vmul.f32 %v314_v26, %v1042_v5  ;;  %v337_v42 = vmul.f32 %v335_v23, %v1075_v40 }
 0x12a   : > { %v557_v50 = vsub.f32 %v541_v34, %v555_v41  ;;  %v597_v54 = vsub.f32 %v593_v38, %v595_v45  ;;  %v448_v41 = vrot.slane %v1048_v2, %v447_v30  ;;  %v433_v43 = vand.u32 2147483647, %v431_v32 }
 0x12b   : > { %v544_v1 = vpop.permute.xlu1 %543 }
 0x12c   : > { %v554_v25 = vmax.f32 %v544_v1, %v553_v21  ;;  %v594_v27 = vmin.f32 %v544_v1, %v553_v21  ;;  %v559_v4 = vmax.f32 %v557_v50, 0.0  ;;  %v1096_v6 = vmul.f32 %v597_v54, %v591_v58 }
 0x12d   : > { %v377_v54 = vrot.slane %v748_v44, %v1061_v17 }
 0x12e   : > { %v556_v35 = vsub.f32 %v540_v29, %v554_v25  ;;  %v596_v39 = vsub.f32 %v592_v31, %v594_v27  ;;  %v1106_v22 = vmul.f32 %v559_v4, %v527_v10  ;;  %v603_v27 = vadd.f32 1e-07, %v1096_v6 }
 0x12f   : > { %v415_v31 = vand.u32 2147483647, %v413_v14 }
 0x130   : > { %v1050_v7 = vpop.permute.xlu1 %385  ;;  %v558_v51 = vmax.f32 %v556_v35, 0.0  ;;  %v1086_v55 = vmul.f32 %v596_v39, %v590_v46 }
 0x131   : > { %v397_v20 = vsub.f32 %v1050_v7, %v396_v59  ;;  %v747_v7 = vsel %vm341_vm2, 1.0, %v915_v8 }
 0x132   : > { %v1094_v63 = vmul.f32 %v558_v51, %v526_v56  ;;  %v602_v0 = vadd.f32 1e-07, %v1086_v55  ;;  %v356_v39 = vrot.slane %v747_v7, %v1061_v17  ;;  %v339_v56 = vadd.f32 %v337_v42, %v316_v12 }
 0x133   : > { %v399_v33 = vand.u32 2147483647, %v397_v20 }
 0x134   : > { %v1053_v11 = vpop.permute.xlu1 %390  ;;  %837 = vrcp.f32 %v602_v0 }
 0x135   : > { %v398_v34 = vsub.f32 %v1053_v11, %v396_v59  ;;  %v417_v45 = vadd.f32 %v415_v31, %v399_v33 }
 0x137   : > { %v400_v46 = vand.u32 2147483647, %v398_v34  ;;  %v435_v59 = vadd.f32 %v433_v43, %v417_v45 }
 0x139   : > { %v1063_v19 = vpop.permute.xlu1 %406 }
 0x13a   : > { %v414_v35 = vsub.f32 %v1063_v19, %v412_v60 }
 0x13c   : > { %v416_v11 = vand.u32 2147483647, %v414_v35 }
 0x13e   : > { %v1069_v28 = vpop.permute.xlu1 %307  ;;  %v838_v2 = vpop.eup %837  ;;  %v418_v58 = vadd.f32 %v416_v11, %v400_v46 }
 0x13f   : > { %v317_v5 = vmul.f32 %v314_v26, %v1069_v28 }
 0x143   : > { %v1081_v48 = vpop.permute.xlu1 %328 }
 0x144   : > { %v338_v40 = vmul.f32 %v335_v23, %v1081_v48 }
 0x146   : > { %v340_v48 = vadd.f32 %v338_v40, %v317_v5 }
 0x187   : > { %v565_v3 = vpop.permute.xlu1 %564 }
 0x188   : > { %v576_v1 = vadd.f32 %v575_v52, %v565_v3 }
 0x18a   : > { %v578_v13 = vsub.f32 %v576_v1, %v1094_v63 }
 0x18b   : > { %v570_v18 = vpop.permute.xlu0 %569 }
 0x18c   : > { %v580_v21 = vadd.f32 1e-07, %v578_v13  ;;  %v577_v24 = vadd.f32 %v575_v52, %v570_v18  ;;  %v425_v25 = vpop.permute.xlu1 %424  ;;  %v600_v19 = vsub.f32 %v1086_v55, %v578_v13 }
 0x18d   : > { %v432_v47 = vsub.f32 %v425_v25, %v430_v16 }
 0x18e   : > { %839 = vrcp.f32 %v580_v21  ;;  %v579_v29 = vsub.f32 %v577_v24, %v1106_v22  ;;  %v605_v62 = vmul.f32 %v838_v2, %v600_v19 }
 0x18f   : > { %841 = vrcp.f32 %v603_v27  ;;  %v434_v60 = vand.u32 2147483647, %v432_v47 }
 0x190   : > { %v581_v36 = vadd.f32 1e-07, %v579_v29  ;;  %v346_v37 = vpop.permute.xlu1 %345  ;;  %v350_v38 = vpop.permute.xlu0 %349  ;;  %v601_v3 = vsub.f32 %v1096_v6, %v579_v29 }
 0x191   : > { %v358_v51 = vmul.f32 %v356_v39, %v346_v37  ;;  %v359_v4 = vmul.f32 %v356_v39, %v350_v38  ;;  %v436_v14 = vadd.f32 %v434_v60, %v418_v58 }
 0x192   : > { %843 = vrcp.f32 %v581_v36 }
 0x193   : > { %v360_v17 = vadd.f32 %v358_v51, %v339_v56  ;;  %v361_v6 = vadd.f32 %v359_v4, %v340_v48 }
 0x195   : > { %v439_v49 = vpop.permute.xlu1 %438  ;;  %v443_v50 = vpop.permute.xlu0 %442 }
 0x196   : > { %v449_v52 = vsub.f32 %v439_v49, %v448_v41  ;;  %v450_v53 = vsub.f32 %v443_v50, %v448_v41 }
 0x198   : > { %v840_v57 = vpop.eup %839  ;;  %v451_v61 = vand.u32 2147483647, %v449_v52  ;;  %v452_v8 = vand.u32 2147483647, %v450_v53 }
 0x199   : > { %v583_v55 = vmul.f32 %v840_v57, %v1094_v63  ;;  %v367_v1 = vpop.permute.xlu1 %366  ;;  %v842_v9 = vpop.eup %841 }
 0x19a   : > { %v453_v0 = vadd.f32 %v451_v61, %v435_v59  ;;  %v379_v28 = vmul.f32 %v377_v54, %v367_v1  ;;  %v607_v18 = vmul.f32 %v842_v9, %v601_v3  ;;  %v454_v24 = vadd.f32 %v452_v8, %v436_v14 }
 0x19b   : > { %v608_v10 = vsub.f32 %v583_v55, %v605_v62 }
 0x19c   : > { %v844_v13 = vpop.eup %843  ;;  %v381_v15 = vadd.f32 %v379_v28, %v360_v17  ;;  %v610_v21 = vmul.f32 5.0, %v453_v0  ;;  %v611_v32 = vmul.f32 5.0, %v454_v24 }
 0x19d   : > { %v616_v16 = vsub.f32 0.0, %v608_v10  ;;  %v585_v63 = vmul.f32 %v844_v13, %v1106_v22  ;;  %v371_v20 = vpop.permute.xlu1 %370 }
 0x19e   : > { %v612_v25 = vmul.f32 2.0, %v381_v15  ;;  %v380_v26 = vmul.f32 %v377_v54, %v371_v20 }
 0x19f   : > { %v609_v27 = vsub.f32 %v585_v63, %v607_v18  ;;  %v618_v23 = vmul.f32 2.0, %v616_v16 }
 0x1a0   : > { %v614_v29 = vadd.f32 %v612_v25, %v610_v21  ;;  %v382_v30 = vadd.f32 %v380_v26, %v361_v6 }
 0x1a1   : > { %v617_v31 = vsub.f32 0.0, %v609_v27 }
 0x1a2   : > { %v620_v7 = vadd.f32 %v618_v23, %v614_v29  ;;  %v613_v22 = vmul.f32 2.0, %v382_v30 }
 0x1a3   : > { %v619_v33 = vmul.f32 2.0, %v617_v31 }
 0x1a4   : > { %622 = vst [vmem:[%s229_s30] sm:$0xff] %v620_v7  ;;  %v615_v34 = vadd.f32 %v613_v22, %v611_v32 }
 0x1a6   : > { %v621_v35 = vadd.f32 %v619_v33, %v615_v34 }
 0x1a8   : > { %623 = vst [vmem:[%s229_s30 + $0x8] sm:$0xff] %v621_v35 }
 0x1a9   : > { %858 = shalt.err (!%p855_p3)
}
 0x1aa   : > { %s859_s13 = scalar_lea.hbm %s1134_s8, 256  ;;  %s863_s22 = scalar_lea.hbm %s1185_s4, 512 }
 0x1ab   : > { %p860_p4 = scmp.ne.s32.totalorder %s1134_s8, %s859_s13  ;;  %p864_p9 = scmp.lt.u32.totalorder %s1134_s8, %s1185_s4 }
 0x1ac   : > { %p865_p10 = scmp.lt.u32.totalorder %s863_s22, %s859_s13  ;;  %p867_p12 = scmp.lt.u32.totalorder %s859_s13, %s1134_s8 }
 0x1ad   : > { %p861_p7 = pnand %p860_p4, %p982_p5 }
 0x1ae   : > { %p866_p11 = por %p865_p10, %p864_p9 }
 0x1af   : > { %p862_p8 = pneg %p861_p7 }
 0x1b0   : > { %p868_p13 = por %p867_p12, %p866_p11 }
 0x1b2   : > { %p869_p0 = pnand %p868_p13, %p862_p8 }
 0x1b4   : > { %872 = shalt.err (!%p869_p0)
}
 0x1b5   : > { %s917_s28 = smov 128   ;;  %s918_s29 = smov 8  }
 0x1b6   : > { %757 = dma.vmem_to_hbm [thread:$0]  (%p982_p5), %s1136_s5, 256, %s1134_s8, %s1140_s9, %s917_s28, %s917_s28, %s918_s29  }
 0x1b7 PF: > { %p763_p1 = scmp.ge.s32.totalorder %s907_s18, 2  ;;  %s653_s30 = sand.u32 1, %s895_s15  }
 0x1b8   : > { %s654_s6 = scalar_lea.sflag [#allocation3], %s653_s30 }
 0x1b9   : > { %p760_p2 = pnand %p763_p1, %p986_p6 }
 0x1bb   : > { %890 = dma.done.wait (!%p760_p2), %s654_s6, 256  }
 0x1bc   : > { %892 = vsyncadd (!%p760_p2), %s654_s6, 4294967040  ;;  %p14_p3 = scmp.ge.s32.totalorder %s969_s21, 4   ;;  %s1188_s15 = smov %s899_s16 }
 0x1bd   : > { %s1189_s16 = smov %s903_s17  ;;  %s1190_s17 = smov %s980_s24 }
 0x1be   : > { %s1191_s18 = smov %s969_s21  ;;  %16 = sbr.rel (!%p14_p3) target bundleno = 3 (0x3), region = 80 }
 0x1c5   :  { %659 = vsyncpa [#allocation3], 1 }
 0x1c6   :  { %661 = vsyncpa [#allocation3 + $0x1], 1 }

</bundles_post_ra>
